<compile_context>
chip_gen: v6e
topology: v6e:2x2x1
jax: 0.10.0
libtpu: 0.0.40
codegen_flags: <defaults>
</compile_context>

<pallas_src>
import math
import functools

import jax
import jax.numpy as jnp
from jax.experimental import pallas as pl
from jax.experimental.pallas import tpu as pltpu


_LANE = 128
_INV_SQRT2 = 1.0 / math.sqrt(2.0)


def _round_up(v, m):
    return ((v + m - 1) // m) * m


def _gelu_exact(h):
    # Exact erf GELU (matches torch.nn.GELU default).  Weakly-typed constants
    # keep the computation in h's dtype (f32 or bf16).
    return 0.5 * h * (1.0 + jax.lax.erf(h * _INV_SQRT2))


def _work_dtype(in_dtype):
    # bf16 inputs -> bf16 GELU (2 elem/lane VPU, half-size intermediate);
    # f32 inputs -> f32 GELU (bit-faithful to the torch reference path).
    return (jnp.bfloat16
            if jnp.dtype(in_dtype) == jnp.dtype(jnp.bfloat16) else jnp.float32)


def _mlp_kernel_resident(x_ref, w1_ref, b1_ref, w2_ref, b2_ref, o_ref):
    x = x_ref[...]
    h = jnp.dot(x, w1_ref[...], preferred_element_type=jnp.float32)
    h = h + b1_ref[...].astype(jnp.float32)
    h = _gelu_exact(h.astype(_work_dtype(x_ref.dtype)))
    # dropout(p=0.0) is identity -> skipped.
    h = h.astype(x_ref.dtype)          # native bf16 MXU path for bf16 inputs
    y = jnp.dot(h, w2_ref[...], preferred_element_type=jnp.float32)
    y = y + b2_ref[...].astype(jnp.float32)
    o_ref[...] = y.astype(o_ref.dtype)


def _mlp_kernel_stream(x_ref, w1_ref, b1_ref, w2_ref, b2_ref, o_ref, acc_ref):
    """Grid = (row_blocks, H_blocks); H is the (innermost) reduction axis."""
    k = pl.program_id(1)

    @pl.when(k == 0)
    def _():
        acc_ref[...] = jnp.zeros_like(acc_ref)

    x = x_ref[...]
    h = jnp.dot(x, w1_ref[...], preferred_element_type=jnp.float32)
    h = h + b1_ref[...].astype(jnp.float32)
    h = _gelu_exact(h.astype(_work_dtype(x_ref.dtype)))
    h = h.astype(x_ref.dtype)
    acc_ref[...] += jnp.dot(h, w2_ref[...], preferred_element_type=jnp.float32)

    @pl.when(k == pl.num_programs(1) - 1)
    def _():
        y = acc_ref[...] + b2_ref[...].astype(jnp.float32)
        o_ref[...] = y.astype(o_ref.dtype)


@functools.partial(jax.jit, static_argnames=("block_rows", "mode", "tile_h"))
def mlp_pallas(x, w1, b1, w2, b2, *, block_rows=None, mode="auto", tile_h=None):
    """x: [B, N, C_in]; w1: [C_in, H]; b1: [H]; w2: [H, C_out]; b2: [C_out].

    Weights are stored transposed vs. PyTorch nn.Linear ([in, out]).
    mode: "auto" (pick by VMEM budget), "resident", or "stream".
    """
    B, N, C_in = x.shape
    H = w1.shape[1]
    C_out = w2.shape[1]
    rows = B * N
    dtype = x.dtype
    itemsize = jnp.dtype(dtype).itemsize
    sublane = 16 if jnp.dtype(dtype) == jnp.dtype(jnp.bfloat16) else 8

    # Per-TensorCore VMEM capacity: 64 MiB on v7x, 128 MiB on v5e/v6e.
    try:
        vmem_cap = int(pltpu.get_tpu_info().vmem_capacity_bytes)
    except Exception:
        vmem_cap = 64 << 20  # conservative (v7x-sized) fallback
    budget = int(0.85 * vmem_cap)

    # Adaptive row tile: big MXU-shaped tiles for long token streams, no wasted
    # compute for tiny row counts; keeps many grid steps so both v7x TCs stay
    # busy under the "parallel" row axis.
    if block_rows is None:
        if rows >= 8192:
            block_rows = 512
        elif rows >= 256:
            block_rows = 256
        else:
            block_rows = _round_up(rows, sublane)
    block_rows = max(int(block_rows), sublane)

    C_in_p = _round_up(C_in, _LANE)
    C_out_p = _round_up(C_out, _LANE)
    H_p = _round_up(H, _LANE)
    rows_p = _round_up(rows, block_rows)

    # Resident-weights footprint (single-buffered weights + double-buffered
    # row tiles + f32 intermediate).
    res_bytes = ((C_in_p * H_p + H_p * C_out_p + H_p + C_out_p) * itemsize
                 + 2 * block_rows * (C_in_p + C_out_p) * itemsize
                 + block_rows * H_p * 4)
    use_stream = (mode == "stream") or (
        mode == "auto" and int(res_bytes * 1.25) > budget)

    if use_stream:
        th = tile_h if tile_h is not None else 512
        th = _round_up(min(th, _round_up(H, _LANE)), _LANE)

        def stream_bytes(t):
            return (2 * (C_in_p * t + t + t * C_out_p) * itemsize   # w1/b1/w2 2-buf
                    + C_out_p * itemsize                            # b2
                    + 2 * block_rows * (C_in_p + C_out_p) * itemsize
                    + block_rows * t * 4                            # f32 intermediate
                    + block_rows * C_out_p * 4)                     # f32 accumulator

        while th > _LANE and int(stream_bytes(th) * 1.25) > budget:
            th = max(_LANE, ((th // 2) // _LANE) * _LANE)
        H_p = _round_up(H, th)
        footprint = stream_bytes(th)
    else:
        th = None
        footprint = res_bytes

    vmem_limit = int(min(budget, int(footprint * 1.5) + (8 << 20)))

    # Pad only when needed (skip the extra HBM pass for aligned ViT shapes).
    x2d = x.reshape(rows, C_in)
    if rows_p != rows or C_in_p != C_in:
        x2d = jnp.pad(x2d, ((0, rows_p - rows), (0, C_in_p - C_in)))
    w1p = w1 if (C_in_p == C_in and H_p == H) else jnp.pad(
        w1, ((0, C_in_p - C_in), (0, H_p - H)))
    b1p = (b1 if H_p == H else jnp.pad(b1, (0, H_p - H))).reshape(1, H_p)
    w2p = w2 if (H_p == H and C_out_p == C_out) else jnp.pad(
        w2, ((0, H_p - H), (0, C_out_p - C_out)))
    b2p = (b2 if C_out_p == C_out else jnp.pad(b2, (0, C_out_p - C_out))
           ).reshape(1, C_out_p)

    n_row_blocks = rows_p // block_rows
    w_elems = C_in_p * H_p + H_p + H_p * C_out_p
    w_reads = (n_row_blocks if use_stream else 1) * w_elems
    cost = pl.CostEstimate(
        flops=2 * rows_p * C_in_p * H_p + 2 * rows_p * H_p * C_out_p,
        transcendentals=rows_p * H_p,
        bytes_accessed=(rows_p * C_in_p + w_reads + C_out_p
                        + rows_p * C_out_p) * itemsize,
    )

    if not use_stream:
        out2d = pl.pallas_call(
            _mlp_kernel_resident,
            out_shape=jax.ShapeDtypeStruct((rows_p, C_out_p), dtype),
            grid_spec=pltpu.PrefetchScalarGridSpec(
                num_scalar_prefetch=0,
                grid=(n_row_blocks,),
                in_specs=[
                    # Row tile of x: streamed (double-buffered).
                    pl.BlockSpec((block_rows, C_in_p), lambda i: (i, 0)),
                    # Resident weights/biases: constant index -> single buffer.
                    pl.BlockSpec((C_in_p, H_p), lambda i: (0, 0),
                                 pipeline_mode=pl.Buffered(1)),
                    pl.BlockSpec((1, H_p), lambda i: (0, 0),
                                 pipeline_mode=pl.Buffered(1)),
                    pl.BlockSpec((H_p, C_out_p), lambda i: (0, 0),
                                 pipeline_mode=pl.Buffered(1)),
                    pl.BlockSpec((1, C_out_p), lambda i: (0, 0),
                                 pipeline_mode=pl.Buffered(1)),
                ],
                out_specs=pl.BlockSpec((block_rows, C_out_p), lambda i: (i, 0)),
            ),
            compiler_params=pltpu.CompilerParams(
                dimension_semantics=("parallel",),
                vmem_limit_bytes=vmem_limit,
            ),
            cost_estimate=cost,
        )(x2d, w1p, b1p, w2p, b2p)
    else:
        out2d = pl.pallas_call(
            _mlp_kernel_stream,
            out_shape=jax.ShapeDtypeStruct((rows_p, C_out_p), dtype),
            grid_spec=pltpu.PrefetchScalarGridSpec(
                num_scalar_prefetch=0,
                grid=(n_row_blocks, H_p // th),
                in_specs=[
                    # x tile depends only on the row index -> stays resident
                    # across the inner H steps.
                    pl.BlockSpec((block_rows, C_in_p), lambda i, k: (i, 0)),
                    # Weight tiles streamed along H (double-buffered).
                    pl.BlockSpec((C_in_p, th), lambda i, k: (0, k)),
                    pl.BlockSpec((1, th), lambda i, k: (0, k)),
                    pl.BlockSpec((th, C_out_p), lambda i, k: (k, 0)),
                    # b2 is constant -> single buffer.
                    pl.BlockSpec((1, C_out_p), lambda i, k: (0, 0),
                                 pipeline_mode=pl.Buffered(1)),
                ],
                out_specs=pl.BlockSpec((block_rows, C_out_p),
                                       lambda i, k: (i, 0)),
                scratch_shapes=[pltpu.VMEM((block_rows, C_out_p), jnp.float32)],
            ),
            compiler_params=pltpu.CompilerParams(
                dimension_semantics=("parallel", "arbitrary"),
                vmem_limit_bytes=vmem_limit,
            ),
            cost_estimate=cost,
        )(x2d, w1p, b1p, w2p, b2p)

    return out2d[:rows, :C_out].reshape(B, N, C_out)


def mlp_reference(x, w1, b1, w2, b2):
    h = x @ w1 + b1
    h = 0.5 * h * (1.0 + jax.lax.erf(h / jnp.sqrt(2.0).astype(h.dtype)))
    return h @ w2 + b2


if __name__ == "__main__":
    # Small shapes consistent with the module's forward: tokens x features.
    B, N = 2, 8
    in_features, hidden_features, out_features = 16, 32, 16

    key = jax.random.PRNGKey(0)
    kx, k1, k2, k3, k4 = jax.random.split(key, 5)

    x = jax.random.normal(kx, (B, N, in_features), dtype=jnp.float32)
    # Deterministic synthetic parameters (nn.Linear shapes, stored transposed).
    w1 = jax.random.normal(k1, (in_features, hidden_features), jnp.float32) * 0.05
    b1 = jax.random.normal(k2, (hidden_features,), jnp.float32) * 0.05
    w2 = jax.random.normal(k3, (hidden_features, out_features), jnp.float32) * 0.05
    b2 = jax.random.normal(k4, (out_features,), jnp.float32) * 0.05

    # Default (auto -> resident-weights) path.
    out = jax.block_until_ready(mlp_pallas(x, w1, b1, w2, b2))
    ref = mlp_reference(x, w1, b1, w2, b2)
    assert out.shape == (B, N, out_features)
    assert jnp.allclose(out, ref, atol=1e-5, rtol=1e-5), "resident path mismatch"

    # Also exercise the H-streaming (large-H / v7x) path at a small shape.
    hidden2 = 288
    k5, k6 = jax.random.split(k4, 2)
    w1b = jax.random.normal(k5, (in_features, hidden2), jnp.float32) * 0.05
    b1b = jax.random.normal(k6, (hidden2,), jnp.float32) * 0.05
    w2b = jax.random.normal(k3, (hidden2, out_features), jnp.float32) * 0.05
    out2 = jax.block_until_ready(
        mlp_pallas(x, w1b, b1b, w2b, b2, mode="stream", tile_h=128))
    ref2 = mlp_reference(x, w1b, b1b, w2b, b2)
    assert out2.shape == (B, N, out_features)
    assert jnp.allclose(out2, ref2, atol=1e-4, rtol=1e-4), "stream path mismatch"

    print("KERNEL_OK")
</pallas_src>

<mosaic_0001>
module attributes {stable_mosaic.version = 11 : i64} {
  func.func @_mlp_kernel_resident(%arg0: i32, %arg1: memref<16x128xf32, #tpu.memory_space<vmem>>, %arg2: memref<128x128xf32, #tpu.memory_space<vmem>>, %arg3: memref<1x128xf32, #tpu.memory_space<vmem>>, %arg4: memref<128x128xf32, #tpu.memory_space<vmem>>, %arg5: memref<1x128xf32, #tpu.memory_space<vmem>>, %arg6: memref<16x128xf32, #tpu.memory_space<vmem>>) attributes {dimension_semantics = [#tpu.dimension_semantics<parallel>], iteration_bounds = array<i64: 1>, scalar_prefetch = 0 : i64, scratch_operands = 0 : i64, tpu.core_type = #tpu.core_type<tc>, window_params = [{transform_indices = @transform_0, window_bounds = array<i64: 16, 128>}, {pipeline_mode = #tpu.pipeline_mode<synchronous>, transform_indices = @transform_1, window_bounds = array<i64: 128, 128>}, {pipeline_mode = #tpu.pipeline_mode<synchronous>, transform_indices = @transform_2, window_bounds = array<i64: 1, 128>}, {pipeline_mode = #tpu.pipeline_mode<synchronous>, transform_indices = @transform_3, window_bounds = array<i64: 128, 128>}, {pipeline_mode = #tpu.pipeline_mode<synchronous>, transform_indices = @transform_4, window_bounds = array<i64: 1, 128>}, {transform_indices = @transform_5, window_bounds = array<i64: 16, 128>}]} {
    %c0 = arith.constant 0 : index
    %c0_0 = arith.constant 0 : index
    %0 = vector.load %arg1[%c0, %c0_0] : memref<16x128xf32, #tpu.memory_space<vmem>>, vector<16x128xf32>
    %c0_1 = arith.constant 0 : index
    %c0_2 = arith.constant 0 : index
    %1 = vector.load %arg2[%c0_1, %c0_2] : memref<128x128xf32, #tpu.memory_space<vmem>>, vector<128x128xf32>
    %cst = arith.constant dense<0.000000e+00> : vector<16x128xf32>
    %2 = tpu.matmul %0, %1, %cst {dimension_numbers = #tpu.dot_dimension_numbers<[1], [0], [0], [1], [0, 0, 1, 1], [], []>} : vector<16x128xf32>, vector<128x128xf32>, vector<16x128xf32> -> vector<16x128xf32>
    %c0_3 = arith.constant 0 : index
    %c0_4 = arith.constant 0 : index
    %3 = vector.load %arg3[%c0_3, %c0_4] : memref<1x128xf32, #tpu.memory_space<vmem>>, vector<1x128xf32>
    %4 = vector.broadcast %3 : vector<1x128xf32> to vector<16x128xf32>
    %5 = arith.addf %2, %4 : vector<16x128xf32>
    %cst_5 = arith.constant 5.000000e-01 : f32
    %6 = vector.broadcast %cst_5 : f32 to vector<16x128xf32>
    %7 = arith.mulf %6, %5 : vector<16x128xf32>
    %cst_6 = arith.constant 0.707106769 : f32
    %8 = vector.broadcast %cst_6 : f32 to vector<16x128xf32>
    %9 = arith.mulf %5, %8 : vector<16x128xf32>
    %10 = math.erf %9 : vector<16x128xf32>
    %cst_7 = arith.constant 1.000000e+00 : f32
    %11 = vector.broadcast %cst_7 : f32 to vector<16x128xf32>
    %12 = arith.addf %11, %10 : vector<16x128xf32>
    %13 = arith.mulf %7, %12 : vector<16x128xf32>
    %c0_8 = arith.constant 0 : index
    %c0_9 = arith.constant 0 : index
    %14 = vector.load %arg4[%c0_8, %c0_9] : memref<128x128xf32, #tpu.memory_space<vmem>>, vector<128x128xf32>
    %cst_10 = arith.constant dense<0.000000e+00> : vector<16x128xf32>
    %15 = tpu.matmul %13, %14, %cst_10 {dimension_numbers = #tpu.dot_dimension_numbers<[1], [0], [0], [1], [0, 0, 1, 1], [], []>} : vector<16x128xf32>, vector<128x128xf32>, vector<16x128xf32> -> vector<16x128xf32>
    %c0_11 = arith.constant 0 : index
    %c0_12 = arith.constant 0 : index
    %16 = vector.load %arg5[%c0_11, %c0_12] : memref<1x128xf32, #tpu.memory_space<vmem>>, vector<1x128xf32>
    %17 = vector.broadcast %16 : vector<1x128xf32> to vector<16x128xf32>
    %18 = arith.addf %15, %17 : vector<16x128xf32>
    %c0_13 = arith.constant 0 : index
    %c0_14 = arith.constant 0 : index
    %19 = vector.load %arg6[%c0_13, %c0_14] : memref<16x128xf32, #tpu.memory_space<vmem>>, vector<16x128xf32>
    tpu.vector_store %arg6[%c0_13, %c0_14], %18 {strides = array<i32>} : memref<16x128xf32, #tpu.memory_space<vmem>>, vector<16x128xf32>,
    return
  }
  func.func @transform_0(%arg0: i32) -> (i32, i32) {
    %c0_i32 = arith.constant 0 : i32
    %c0_i32_0 = arith.constant 0 : i32
    return %arg0, %c0_i32 : i32, i32
  }
  func.func @transform_1(%arg0: i32) -> (i32, i32) {
    %c0_i32 = arith.constant 0 : i32
    %c0_i32_0 = arith.constant 0 : i32
    %c0_i32_1 = arith.constant 0 : i32
    return %c0_i32, %c0_i32_0 : i32, i32
  }
  func.func @transform_2(%arg0: i32) -> (i32, i32) {
    %c0_i32 = arith.constant 0 : i32
    %c0_i32_0 = arith.constant 0 : i32
    %c0_i32_1 = arith.constant 0 : i32
    return %c0_i32, %c0_i32_0 : i32, i32
  }
  func.func @transform_3(%arg0: i32) -> (i32, i32) {
    %c0_i32 = arith.constant 0 : i32
    %c0_i32_0 = arith.constant 0 : i32
    %c0_i32_1 = arith.constant 0 : i32
    return %c0_i32, %c0_i32_0 : i32, i32
  }
  func.func @transform_4(%arg0: i32) -> (i32, i32) {
    %c0_i32 = arith.constant 0 : i32
    %c0_i32_0 = arith.constant 0 : i32
    %c0_i32_1 = arith.constant 0 : i32
    return %c0_i32, %c0_i32_0 : i32, i32
  }
  func.func @transform_5(%arg0: i32) -> (i32, i32) {
    %c0_i32 = arith.constant 0 : i32
    %c0_i32_0 = arith.constant 0 : i32
    return %arg0, %c0_i32 : i32, i32
  }
}

</mosaic_0001>

<bundles_post_ra>
// kernel: mlp_pallas.1
= control target key start
LH: loop header
LB: loop body
LE: loop exit
PB: predicated region body
PF: predicated region fallthrough
CT: control target
= control target key end

     0   :  { %s490_s1 = inlined_call_operand.vmem [shape: f32[128,128], index: 1, kind: input, shape index: {}]   ;;  %s491_s0 = inlined_call_operand.vmem [shape: f32[16,128], index: 0, kind: input, shape index: {}]   ;;  %s492_s3 = inlined_call_operand.vmem [shape: f32[128,128], index: 3, kind: input, shape index: {}]   ;;  %s493_s2 = inlined_call_operand.vmem [shape: f32[1,128], index: 2, kind: input, shape index: {}]   ;;  %s494_s4 = inlined_call_operand.vmem [shape: f32[1,128], index: 4, kind: input, shape index: {}]   ;;  %s495_s5 = inlined_call_operand.vmem [shape: f32[16,128], index: 5, kind: output, shape index: {}]  }
   0x1   :  { %v37_v0 = vld [vmem:[%s490_s1 + $0x78] sm:$0xff]  ;;  %v36_v1 = vld [vmem:[%s490_s1 + $0x70] sm:$0xff]  ;;  %v35_v2 = vld [vmem:[%s490_s1 + $0x68] sm:$0xff] }
   0x2   :  { %272 = vmatprep.subr.mxu0 %v37_v0  ;;  %v34_v3 = vld [vmem:[%s490_s1 + $0x60] sm:$0xff]  ;;  %v33_v5 = vld [vmem:[%s490_s1 + $0x58] sm:$0xff]  ;;  %v144_v7 = vld [vmem:[%s492_s3 + $0x70] sm:$0xff] }
   0x3   :  { %273 = vmatpush3.msra.mxu0 %v37_v0  ;;  %v20_v4 = vld [vmem:[%s491_s0] sm:$0xff]  ;;  %v145_v6 = vld [vmem:[%s492_s3 + $0x78] sm:$0xff]  ;;  %v32_v8 = vld [vmem:[%s490_s1 + $0x50] sm:$0xff] }
   0x4   :  { %274 = vmatprep.subr.mxu0 %v36_v1  ;;  %304 = vmatprep.mubr.f32.mxu0 %v20_v4  ;;  %v143_v9 = vld [vmem:[%s492_s3 + $0x68] sm:$0xff]  ;;  %v30_v11 = vld [vmem:[%s490_s1 + $0x40] sm:$0xff]  ;;  %v29_v12 = vld [vmem:[%s490_s1 + $0x38] sm:$0xff] }
   0x5   :  { %275 = vmatpush3.msra.mxu0 %v36_v1  ;;  %307 = vmatprep.subr.mxu1 %v145_v6  ;;  %v31_v10 = vld [vmem:[%s490_s1 + $0x48] sm:$0xff]  ;;  %v28_v13 = vld [vmem:[%s490_s1 + $0x30] sm:$0xff]  ;;  %v26_v15 = vld [vmem:[%s490_s1 + $0x20] sm:$0xff] }
   0x6   :  { %276 = vmatprep.subr.mxu0 %v35_v2  ;;  %308 = vmatpush3.msra.mxu1 %v145_v6  ;;  %v27_v14 = vld [vmem:[%s490_s1 + $0x28] sm:$0xff]  ;;  %v25_v16 = vld [vmem:[%s490_s1 + $0x18] sm:$0xff]  ;;  %v24_v17 = vld [vmem:[%s490_s1 + $0x10] sm:$0xff] }
   0x7   :  { %277 = vmatpush3.msra.mxu0 %v35_v2  ;;  %309 = vmatprep.subr.mxu1 %v144_v7  ;;  %v23_v18 = vld [vmem:[%s490_s1 + $0x8] sm:$0xff]  ;;  %v22_v19 = vld [vmem:[%s490_s1] sm:$0xff]  ;;  %v141_v22 = vld [vmem:[%s492_s3 + $0x58] sm:$0xff] }
   0x8   :  { %278 = vmatprep.subr.mxu0 %v34_v3  ;;  %310 = vmatpush3.msra.mxu1 %v144_v7  ;;  %v21_v20 = vld [vmem:[%s491_s0 + $0x8] sm:$0xff]  ;;  %v142_v21 = vld [vmem:[%s492_s3 + $0x60] sm:$0xff]  ;;  %v140_v23 = vld [vmem:[%s492_s3 + $0x50] sm:$0xff] }
   0x9   :  { %279 = vmatpush3.msra.mxu0 %v34_v3  ;;  %311 = vmatprep.subr.mxu1 %v143_v9  ;;  %v139_v24 = vld [vmem:[%s492_s3 + $0x48] sm:$0xff]  ;;  %v138_v25 = vld [vmem:[%s492_s3 + $0x40] sm:$0xff]  ;;  %v137_v26 = vld [vmem:[%s492_s3 + $0x38] sm:$0xff] }
   0xa   :  { %280 = vmatprep.subr.mxu0 %v33_v5  ;;  %312 = vmatpush3.msra.mxu1 %v143_v9  ;;  %v136_v27 = vld [vmem:[%s492_s3 + $0x30] sm:$0xff]  ;;  %v135_v28 = vld [vmem:[%s492_s3 + $0x28] sm:$0xff]  ;;  %v134_v29 = vld [vmem:[%s492_s3 + $0x20] sm:$0xff] }
   0xb   :  { %281 = vmatpush3.msra.mxu0 %v33_v5  ;;  %313 = vmatprep.subr.mxu1 %v142_v21  ;;  %v133_v30 = vld [vmem:[%s492_s3 + $0x18] sm:$0xff]  ;;  %v132_v31 = vld [vmem:[%s492_s3 + $0x10] sm:$0xff]  ;;  %v131_v32 = vld [vmem:[%s492_s3 + $0x8] sm:$0xff] }
   0xc   :  { %282 = vmatprep.subr.mxu0 %v32_v8  ;;  %314 = vmatpush3.msra.mxu1 %v142_v21  ;;  %v130_v33 = vld [vmem:[%s492_s3] sm:$0xff] }
   0xd   :  { %283 = vmatpush3.msra.mxu0 %v32_v8  ;;  %315 = vmatprep.subr.mxu1 %v141_v22  ;;  %v234_v34 = vld [vmem:[%s493_s2] ss:$0 sm:$0xff] }
   0xe   :  { %284 = vmatprep.subr.mxu0 %v31_v10  ;;  %316 = vmatpush3.msra.mxu1 %v141_v22  ;;  %v235_v49 = vld [vmem:[%s494_s4] ss:$0 sm:$0xff] }
   0xf   :  { %285 = vmatpush3.msra.mxu0 %v31_v10  ;;  %317 = vmatprep.subr.mxu1 %v140_v23 }
  0x10   :  { %286 = vmatprep.subr.mxu0 %v30_v11  ;;  %318 = vmatpush3.msra.mxu1 %v140_v23 }
  0x11   :  { %287 = vmatpush3.msra.mxu0 %v30_v11  ;;  %319 = vmatprep.subr.mxu1 %v139_v24 }
  0x12   :  { %288 = vmatprep.subr.mxu0 %v29_v12  ;;  %320 = vmatpush3.msra.mxu1 %v139_v24 }
  0x13   :  { %289 = vmatpush3.msra.mxu0 %v29_v12  ;;  %321 = vmatprep.subr.mxu1 %v138_v25 }
  0x14   :  { %290 = vmatprep.subr.mxu0 %v28_v13  ;;  %322 = vmatpush3.msra.mxu1 %v138_v25 }
  0x15   :  { %291 = vmatpush3.msra.mxu0 %v28_v13  ;;  %323 = vmatprep.subr.mxu1 %v137_v26 }
  0x16   :  { %292 = vmatprep.subr.mxu0 %v27_v14  ;;  %324 = vmatpush3.msra.mxu1 %v137_v26 }
  0x17   :  { %293 = vmatpush3.msra.mxu0 %v27_v14  ;;  %325 = vmatprep.subr.mxu1 %v136_v27 }
  0x18   :  { %294 = vmatprep.subr.mxu0 %v26_v15  ;;  %326 = vmatpush3.msra.mxu1 %v136_v27 }
  0x19   :  { %295 = vmatpush3.msra.mxu0 %v26_v15  ;;  %327 = vmatprep.subr.mxu1 %v135_v28 }
  0x1a   :  { %296 = vmatprep.subr.mxu0 %v25_v16  ;;  %328 = vmatpush3.msra.mxu1 %v135_v28 }
  0x1b   :  { %297 = vmatpush3.msra.mxu0 %v25_v16  ;;  %329 = vmatprep.subr.mxu1 %v134_v29 }
  0x1c   :  { %298 = vmatprep.subr.mxu0 %v24_v17  ;;  %330 = vmatpush3.msra.mxu1 %v134_v29 }
  0x1d   :  { %299 = vmatpush3.msra.mxu0 %v24_v17  ;;  %331 = vmatprep.subr.mxu1 %v133_v30 }
  0x1e   :  { %300 = vmatprep.subr.mxu0 %v23_v18  ;;  %332 = vmatpush3.msra.mxu1 %v133_v30 }
  0x1f   :  { %301 = vmatpush3.msra.mxu0 %v23_v18  ;;  %333 = vmatprep.subr.mxu1 %v132_v31 }
  0x20   :  { %302 = vmatprep.subr.mxu0 %v22_v19  ;;  %334 = vmatpush3.msra.mxu1 %v132_v31 }
  0x21   :  { %303 = vmatpush3.msra.mxu0 %v22_v19  ;;  %335 = vmatprep.subr.mxu1 %v131_v32 }
  0x22   :  { %305 = vmatmul.mubr.f32.vlgmr.msra.gmra.mxu0 %v21_v20  ;;  %336 = vmatpush3.msra.mxu1 %v131_v32 }
  0x23   :  { %337 = vmatprep.subr.mxu1 %v130_v33 }
  0x24   :  { %338 = vmatpush3.msra.mxu1 %v130_v33 }
  0xe2   :  { %v306_v35 = vpop.f32.mrf.mxu0 }
  0xe3   :  { %v117_v36 = vadd.f32 %v306_v35, %v234_v34 }
  0xe4   :  { %v111_v37 = vpop.f32.mrf.mxu0 }
  0xe5   :  { %v123_v38 = vmul.f32 0.70710677, %v117_v36  ;;  %v112_v39 = vadd.f32 %v234_v34, %v111_v37  ;;  %v121_v46 = vmul.f32 0.5, %v117_v36 }
  0xe7   :  { %342 = verf.f32 %v123_v38  ;;  %v122_v40 = vmul.f32 0.70710677, %v112_v39  ;;  %v120_v44 = vmul.f32 0.5, %v112_v39 }
  0xe9   :  { %344 = verf.f32 %v122_v40 }
  0xf4   :  { %v343_v41 = vpop.eup %342 }
  0xf5   :  { %v127_v43 = vadd.f32 1.0, %v343_v41 }
  0xf6   :  { %v345_v42 = vpop.eup %344 }
  0xf7   :  { %v126_v45 = vadd.f32 1.0, %v345_v42  ;;  %v129_v48 = vmul.f32 %v127_v43, %v121_v46 }
  0xf9   :  { %v128_v47 = vmul.f32 %v126_v45, %v120_v44 }
  0xfb   :  { %339 = vmatprep.mubr.f32.mxu1 %v128_v47 }
  0xfc   :  { %340 = vmatmul.mubr.f32.vlgmr.msra.gmra.mxu1 %v129_v48 }
 0x1bc   :  { %v341_v50 = vpop.f32.mrf.mxu1 }
 0x1bd   :  { %v225_v51 = vadd.f32 %v341_v50, %v235_v49 }
 0x1be   :  { %v219_v52 = vpop.f32.mrf.mxu1 }
 0x1bf   :  { %229 = vst [vmem:[%s495_s5 + $0x8] sm:$0xff] %v225_v51  ;;  %v220_v53 = vadd.f32 %v235_v49, %v219_v52 }
 0x1c1   :  { %228 = vst [vmem:[%s495_s5] sm:$0xff] %v220_v53 }

</bundles_post_ra>
